<compile_context>
chip_gen: v7x
topology: tpu7x:2x2x1
jax: 0.10.0
libtpu: 0.0.40
codegen_flags: <defaults>
</compile_context>

<pallas_src>
import functools

import jax
import jax.numpy as jnp
from jax.experimental import pallas as pl
from jax.experimental.pallas import tpu as pltpu

_LANES = 128
_SUBLANES = 8
_MAX_TILE_ROWS = 2048   # 2048 x 128 f32 = 1 MiB per input block


def _nan_mse_kernel(o_ref, t_ref, out_ref, sum_acc, cnt_acc, *,
                    steps_per_split):
    """Masked squared-error accumulation with in-kernel final reduction.

    o_ref, t_ref : (tile_rows, 128) input tiles (any float dtype)
    out_ref      : (1, 16, 128) f32 per-split result block
                   rows 0..7  = broadcast sum of squared errors
                   rows 8..15 = broadcast count of finite target elements
    sum_acc      : (tile_rows, 128) f32 VMEM scratch (resident across i)
    cnt_acc      : (tile_rows, 128) f32 VMEM scratch (resident across i)
    """
    i = pl.program_id(1)

    @pl.when(i == 0)
    def _():
        sum_acc[...] = jnp.zeros_like(sum_acc)
        cnt_acc[...] = jnp.zeros_like(cnt_acc)

    o = o_ref[...].astype(jnp.float32)
    t = t_ref[...].astype(jnp.float32)

    mask = jnp.isfinite(t)
    # Select (not multiply) so NaN/Inf in masked-out / padded slots never
    # propagate into the accumulator.
    diff = jnp.where(mask, o - t, jnp.float32(0.0))

    # Pure VPU elementwise accumulation; no per-step cross-lane reduction.
    sum_acc[...] += diff * diff
    cnt_acc[...] += mask.astype(jnp.float32)

    # One XLU reduce per split, on the last step only; rides a free VLIW slot
    # in this VPU/HBM-bound kernel.
    @pl.when(i == steps_per_split - 1)
    def _():
        s = jnp.sum(sum_acc[...])
        c = jnp.sum(cnt_acc[...])
        row = jax.lax.broadcasted_iota(jnp.int32, (2 * _SUBLANES, _LANES), 0)
        out_ref[0] = jnp.where(row < _SUBLANES, s, c)


@jax.jit
def nan_mse_loss(output, target):
    """Pallas implementation of NaNMSELoss.forward(output, target)."""
    assert output.shape == target.shape
    o = output.reshape(-1)
    t = target.reshape(-1)
    n = o.shape[0]

    # --- Trace-time tiling decisions -------------------------------------
    rows = -(-n // _LANES)                              # lane-aligned rows
    if rows <= _MAX_TILE_ROWS:
        # Whole problem is one grid step (the primary (2,4,16,16) workload).
        tile_rows = -(-rows // _SUBLANES) * _SUBLANES   # sublane-align
        num_splits, steps_per_split = 1, 1
    else:
        tile_rows = _MAX_TILE_ROWS
        steps_total = -(-rows // tile_rows)
        # Always engage both v7x TensorCores on multi-step inputs; odd step
        # counts are absorbed by the padding below, never by dropping the
        # split.  On single-TC chips this is a harmless serial loop.
        num_splits = 2
        steps_per_split = -(-steps_total // num_splits)
    rows_padded = num_splits * steps_per_split * tile_rows

    # Pad to the exact grid extent.  Padded targets are NaN so they are
    # masked out exactly like non-finite entries; this removes every
    # row-validity check from the kernel body.  No-op for aligned inputs.
    pad = rows_padded * _LANES - n
    if pad:
        o = jnp.concatenate([o, jnp.zeros((pad,), o.dtype)])
        t = jnp.concatenate([t, jnp.full((pad,), jnp.nan, t.dtype)])
    o2 = o.reshape(rows_padded, _LANES)
    t2 = t.reshape(rows_padded, _LANES)

    in_map = lambda c, i: (c * steps_per_split + i, 0)
    out_map = lambda c, i: (c, 0, 0)

    kernel = functools.partial(_nan_mse_kernel,
                               steps_per_split=steps_per_split)

    partials = pl.pallas_call(
        kernel,
        out_shape=jax.ShapeDtypeStruct(
            (num_splits, 2 * _SUBLANES, _LANES), jnp.float32),
        grid_spec=pltpu.PrefetchScalarGridSpec(
            num_scalar_prefetch=0,
            grid=(num_splits, steps_per_split),
            in_specs=[
                pl.BlockSpec((tile_rows, _LANES), in_map),
                pl.BlockSpec((tile_rows, _LANES), in_map),
            ],
            out_specs=pl.BlockSpec((1, 2 * _SUBLANES, _LANES), out_map),
            scratch_shapes=[
                pltpu.VMEM((tile_rows, _LANES), jnp.float32),   # sum acc
                pltpu.VMEM((tile_rows, _LANES), jnp.float32),   # count acc
            ],
        ),
        compiler_params=pltpu.CompilerParams(
            dimension_semantics=("parallel", "arbitrary")),
    )(o2, t2)

    # Combine <=2 per-split scalars and divide; the heavy reduction already
    # happened inside the kernel's last grid step.
    s = jnp.sum(partials[:, 0, 0])
    c = jnp.sum(partials[:, _SUBLANES, 0])
    # PyTorch returns 0.0 when no finite target element exists.
    return jnp.where(c > 0, s / jnp.maximum(c, 1.0), jnp.float32(0.0))


def _reference(output, target):
    mask = jnp.isfinite(target)
    diff = jnp.where(mask, output - target, 0.0)
    c = jnp.sum(mask)
    return jnp.where(c > 0, jnp.sum(diff * diff) / jnp.maximum(c, 1), 0.0)


def _check(output, target, rtol=1e-4, atol=1e-6):
    loss = jax.block_until_ready(nan_mse_loss(output, target))
    ref = _reference(output.astype(jnp.float32), target.astype(jnp.float32))
    assert jnp.allclose(loss, ref, rtol=rtol, atol=atol), (loss, ref)
    return loss


if __name__ == "__main__":
    key = jax.random.PRNGKey(0)
    k1, k2, k3, k4, k5, k6 = jax.random.split(key, 6)

    # Primary workload: NCHW (2,4,16,16) f32 -> single-step kernel, no grid
    # loop, in-kernel reduce, no extra HBM roundtrip.
    shape = (2, 4, 16, 16)
    output = jax.random.normal(k1, shape, dtype=jnp.float32)
    target = jax.random.normal(k2, shape, dtype=jnp.float32)
    nan_mask = jax.random.bernoulli(k3, p=0.2, shape=shape)
    target = jnp.where(nan_mask, jnp.nan, target)
    target = target.at[0, 0, 0, 0].set(jnp.inf)
    _check(output, target)

    # All-NaN target -> 0.0 (matches PyTorch's early-return branch).
    loss0 = jax.block_until_ready(
        nan_mse_loss(output, jnp.full(shape, jnp.nan, jnp.float32)))
    assert float(loss0) == 0.0

    # Multi-step input: 786432 elems -> 6144 rows -> 3 tiles of 2048 rows,
    # padded to 4 so the 2-way parallel split always engages; exercises the
    # accumulate-across-steps path and NaN row padding.
    shape2 = (24, 8, 64, 64)
    o2 = jax.random.normal(k4, shape2, dtype=jnp.float32)
    t2 = jax.random.normal(k5, shape2, dtype=jnp.float32)
    t2 = jnp.where(jax.random.bernoulli(k6, p=0.3, shape=shape2), jnp.nan, t2)
    _check(o2, t2)

    # Ragged size exercising the lane/sublane alignment pad (1014 elements).
    shape3 = (2, 3, 13, 13)
    o3 = jax.random.normal(k1, shape3, dtype=jnp.float32)
    t3 = jax.random.normal(k2, shape3, dtype=jnp.float32)
    t3 = t3.at[1, 2, 0, 5].set(jnp.nan)
    _check(o3, t3)

    print("KERNEL_OK")
</pallas_src>

<mosaic_0001>
module attributes {stable_mosaic.version = 11 : i64} {
  func.func @_nan_mse_kernel(%arg0: i32, %arg1: i32, %arg2: memref<16x128xf32, #tpu.memory_space<vmem>>, %arg3: memref<16x128xf32, #tpu.memory_space<vmem>>, %arg4: memref<1x16x128xf32, #tpu.memory_space<vmem>>, %arg5: memref<16x128xf32, #tpu.memory_space<vmem>>, %arg6: memref<16x128xf32, #tpu.memory_space<vmem>>) attributes {dimension_semantics = [#tpu.dimension_semantics<parallel>, #tpu.dimension_semantics<arbitrary>], iteration_bounds = array<i64: 1, 1>, scalar_prefetch = 0 : i64, scratch_operands = 2 : i64, tpu.core_type = #tpu.core_type<tc>, window_params = [{transform_indices = @transform_0, window_bounds = array<i64: 16, 128>}, {transform_indices = @transform_1, window_bounds = array<i64: 16, 128>}, {transform_indices = @transform_2, window_bounds = array<i64: 1, 16, 128>}]} {
    %c0_i32 = arith.constant 0 : i32
    %0 = arith.cmpi eq, %arg1, %c0_i32 : i32
    %1 = arith.extui %0 : i1 to i32
    %c0_i32_0 = arith.constant 0 : i32
    %2 = arith.cmpi ne, %1, %c0_i32_0 : i32
    scf.if %2 {
      %cst_15 = arith.constant 0.000000e+00 : f32
      %22 = vector.broadcast %cst_15 : f32 to vector<16x128xf32>
      %c0_16 = arith.constant 0 : index
      %c0_17 = arith.constant 0 : index
      %23 = vector.load %arg5[%c0_16, %c0_17] : memref<16x128xf32, #tpu.memory_space<vmem>>, vector<16x128xf32>
      tpu.vector_store %arg5[%c0_16, %c0_17], %22 {strides = array<i32>} : memref<16x128xf32, #tpu.memory_space<vmem>>, vector<16x128xf32>,
      %cst_18 = arith.constant 0.000000e+00 : f32
      %24 = vector.broadcast %cst_18 : f32 to vector<16x128xf32>
      %c0_19 = arith.constant 0 : index
      %c0_20 = arith.constant 0 : index
      %25 = vector.load %arg6[%c0_19, %c0_20] : memref<16x128xf32, #tpu.memory_space<vmem>>, vector<16x128xf32>
      tpu.vector_store %arg6[%c0_19, %c0_20], %24 {strides = array<i32>} : memref<16x128xf32, #tpu.memory_space<vmem>>, vector<16x128xf32>,
    } else {
    }
    %c0 = arith.constant 0 : index
    %c0_1 = arith.constant 0 : index
    %3 = vector.load %arg2[%c0, %c0_1] : memref<16x128xf32, #tpu.memory_space<vmem>>, vector<16x128xf32>
    %c0_2 = arith.constant 0 : index
    %c0_3 = arith.constant 0 : index
    %4 = vector.load %arg3[%c0_2, %c0_3] : memref<16x128xf32, #tpu.memory_space<vmem>>, vector<16x128xf32>
    %5 = tpu.weird %4 : vector<16x128xf32> -> vector<16x128xi1>
    %cst = arith.constant dense<true> : vector<16x128xi1>
    %6 = arith.xori %5, %cst : vector<16x128xi1>
    %7 = arith.subf %3, %4 : vector<16x128xf32>
    %cst_4 = arith.constant 0.000000e+00 : f32
    %8 = vector.broadcast %cst_4 : f32 to vector<16x128xf32>
    %9 = arith.select %6, %7, %8 : vector<16x128xi1>, vector<16x128xf32>
    %c0_5 = arith.constant 0 : index
    %c0_6 = arith.constant 0 : index
    %10 = vector.load %arg5[%c0_5, %c0_6] : memref<16x128xf32, #tpu.memory_space<vmem>>, vector<16x128xf32>
    %11 = arith.mulf %9, %9 : vector<16x128xf32>
    %12 = arith.addf %10, %11 : vector<16x128xf32>
    %c0_7 = arith.constant 0 : index
    %c0_8 = arith.constant 0 : index
    %13 = vector.load %arg5[%c0_7, %c0_8] : memref<16x128xf32, #tpu.memory_space<vmem>>, vector<16x128xf32>
    tpu.vector_store %arg5[%c0_7, %c0_8], %12 {strides = array<i32>} : memref<16x128xf32, #tpu.memory_space<vmem>>, vector<16x128xf32>,
    %c0_9 = arith.constant 0 : index
    %c0_10 = arith.constant 0 : index
    %14 = vector.load %arg6[%c0_9, %c0_10] : memref<16x128xf32, #tpu.memory_space<vmem>>, vector<16x128xf32>
    %15 = arith.extui %6 : vector<16x128xi1> to vector<16x128xi32>
    %16 = arith.sitofp %15 : vector<16x128xi32> to vector<16x128xf32>
    %17 = arith.addf %14, %16 : vector<16x128xf32>
    %c0_11 = arith.constant 0 : index
    %c0_12 = arith.constant 0 : index
    %18 = vector.load %arg6[%c0_11, %c0_12] : memref<16x128xf32, #tpu.memory_space<vmem>>, vector<16x128xf32>
    tpu.vector_store %arg6[%c0_11, %c0_12], %17 {strides = array<i32>} : memref<16x128xf32, #tpu.memory_space<vmem>>, vector<16x128xf32>,
    %c0_i32_13 = arith.constant 0 : i32
    %19 = arith.cmpi eq, %arg1, %c0_i32_13 : i32
    %20 = arith.extui %19 : i1 to i32
    %c0_i32_14 = arith.constant 0 : i32
    %21 = arith.cmpi ne, %20, %c0_i32_14 : i32
    scf.if %21 {
      %c0_15 = arith.constant 0 : index
      %c0_16 = arith.constant 0 : index
      %22 = vector.load %arg5[%c0_15, %c0_16] : memref<16x128xf32, #tpu.memory_space<vmem>>, vector<16x128xf32>
      %23 = vector.shape_cast %22 : vector<16x128xf32> to vector<1x16x128xf32>
      %cst_17 = arith.constant dense<0.000000e+00> : vector<1xf32>
      %24 = vector.multi_reduction <add>, %23, %cst_17 [1, 2] : vector<1x16x128xf32> to vector<1xf32>
      %25 = vector.shape_cast %24 : vector<1xf32> to vector<1x1x1xf32>
      %26 = vector.extract %25[0, 0, 0] : f32 from vector<1x1x1xf32>
      %c0_18 = arith.constant 0 : index
      %c0_19 = arith.constant 0 : index
      %27 = vector.load %arg6[%c0_18, %c0_19] : memref<16x128xf32, #tpu.memory_space<vmem>>, vector<16x128xf32>
      %28 = vector.shape_cast %27 : vector<16x128xf32> to vector<1x16x128xf32>
      %cst_20 = arith.constant dense<0.000000e+00> : vector<1xf32>
      %29 = vector.multi_reduction <add>, %28, %cst_20 [1, 2] : vector<1x16x128xf32> to vector<1xf32>
      %30 = vector.shape_cast %29 : vector<1xf32> to vector<1x1x1xf32>
      %31 = vector.extract %30[0, 0, 0] : f32 from vector<1x1x1xf32>
      %32 = tpu.iota {dimensions = array<i32: 0>} : vector<16x128xi32>
      %c8_i32 = arith.constant 8 : i32
      %33 = vector.broadcast %c8_i32 : i32 to vector<16x128xi32>
      %34 = arith.cmpi slt, %32, %33 : vector<16x128xi32>
      %35 = vector.broadcast %26 : f32 to vector<16x128xf32>
      %36 = vector.broadcast %31 : f32 to vector<16x128xf32>
      %37 = arith.select %34, %35, %36 : vector<16x128xi1>, vector<16x128xf32>
      %c0_21 = arith.constant 0 : index
      %c0_22 = arith.constant 0 : index
      %c0_23 = arith.constant 0 : index
      %38 = vector.load %arg4[%c0_21, %c0_22, %c0_23] : memref<1x16x128xf32, #tpu.memory_space<vmem>>, vector<1x16x128xf32>
      %39 = vector.shape_cast %38 : vector<1x16x128xf32> to vector<16x128xf32>
      %40 = vector.shape_cast %37 : vector<16x128xf32> to vector<1x16x128xf32>
      tpu.vector_store %arg4[%c0_21, %c0_22, %c0_23], %40 {strides = array<i32>} : memref<1x16x128xf32, #tpu.memory_space<vmem>>, vector<1x16x128xf32>,
    } else {
    }
    return
  }
  func.func @transform_0(%arg0: i32, %arg1: i32) -> (i32, i32) {
    %c1_i32 = arith.constant 1 : i32
    %0 = arith.muli %arg0, %c1_i32 : i32
    %1 = arith.addi %0, %arg1 : i32
    %c0_i32 = arith.constant 0 : i32
    %c0_i32_0 = arith.constant 0 : i32
    return %1, %c0_i32 : i32, i32
  }
  func.func @transform_1(%arg0: i32, %arg1: i32) -> (i32, i32) {
    %c1_i32 = arith.constant 1 : i32
    %0 = arith.muli %arg0, %c1_i32 : i32
    %1 = arith.addi %0, %arg1 : i32
    %c0_i32 = arith.constant 0 : i32
    %c0_i32_0 = arith.constant 0 : i32
    return %1, %c0_i32 : i32, i32
  }
  func.func @transform_2(%arg0: i32, %arg1: i32) -> (i32, i32, i32) {
    %c0_i32 = arith.constant 0 : i32
    %c0_i32_0 = arith.constant 0 : i32
    %c0_i32_1 = arith.constant 0 : i32
    return %arg0, %c0_i32, %c0_i32_0 : i32, i32, i32
  }
}

</mosaic_0001>

<bundles_post_ra>
// kernel: nan_mse_loss.1
= control target key start
LH: loop header
LB: loop body
LE: loop exit
PB: predicated region body
PF: predicated region fallthrough
CT: control target
= control target key end

     0   :  { %vm155_vm2 = vmmov 1   ;;  %v156_v10 = vmov 0.0   ;;  %s190_s0 = inlined_call_operand.vmem [shape: f32[16,128], index: 0, kind: input, shape index: {}]   ;;  %s191_s1 = inlined_call_operand.vmem [shape: f32[16,128], index: 1, kind: input, shape index: {}]   ;;  %s192_s2 = inlined_call_operand.vmem [shape: f32[1,16,128], index: 2, kind: output, shape index: {}]  }
   0x1   :  { %v63_v0 = vld [vmem:[%s190_s0] sm:$0xff]  ;;  %v64_v1 = vld [vmem:[%s190_s0 + $0x8] sm:$0xff] }
   0x2   :  { %v65_v2 = vld [vmem:[%s191_s1] sm:$0xff]  ;;  %v66_v3 = vld [vmem:[%s191_s1 + $0x8] sm:$0xff] }
   0x3   :  { %vm67_vm0 = vweird.f32 %v65_v2  ;;  %v71_v4 = vsub.f32 %v63_v0, %v65_v2  ;;  %vm68_vm1 = vweird.f32 %v66_v3  ;;  %v72_v5 = vsub.f32 %v64_v1, %v66_v3 }
   0x4   :  { %vm69_vm3 = vmxor %vm67_vm0, %vm155_vm2 }
   0x5   :  { %vm70_vm4 = vmxor %vm68_vm1, %vm155_vm2  ;;  %v73_v6 = vsel %vm69_vm3, %v71_v4, 0.0  ;;  %v147_v11 = vsel %vm69_vm3, 1.0, %v156_v10 }
   0x6   :  { %v74_v7 = vsel %vm70_vm4, %v72_v5, 0.0  ;;  %v77_v8 = vmul.f32 %v73_v6, %v73_v6  ;;  %v148_v12 = vsel %vm70_vm4, 1.0, %v156_v10 }
   0x7   :  { %v78_v9 = vmul.f32 %v74_v7, %v74_v7  ;;  %v110_v14 = vadd.f32 %v148_v12, %v147_v11 }
   0x9   :  { %v98_v13 = vadd.f32 %v78_v9, %v77_v8 }
   0xb   :  { %99 = vadd.xlane.f32.xlu0 %v98_v13 }
   0xf   :  { %111 = vadd.xlane.f32.xlu0 %v110_v14 }
  0x98   :  { %v100_v15 = vpop.xlane.xlu0 %99 }
  0x99   :  { %v101_v16 = vrot.slane %v100_v15, 4 }
  0x9b   :  { %v102_v17 = vadd.f32 %v101_v16, %v100_v15 }
  0x9c   :  { %v112_v18 = vpop.xlane.xlu0 %111 }
  0x9d   :  { %v103_v19 = vrot.slane %v102_v17, 2  ;;  %v113_v20 = vrot.slane %v112_v18, 4 }
  0x9f   :  { %v114_v21 = vadd.f32 %v113_v20, %v112_v18  ;;  %v104_v22 = vadd.f32 %v103_v19, %v102_v17 }
  0xa1   :  { %v115_v23 = vrot.slane %v114_v21, 2  ;;  %v105_v24 = vrot.slane %v104_v22, 1 }
  0xa3   :  { %v116_v25 = vadd.f32 %v115_v23, %v114_v21  ;;  %v106_v26 = vadd.f32 %v105_v24, %v104_v22 }
  0xa5   :  { %149 = vpush %v106_v26  ;;  %v117_v27 = vrot.slane %v116_v25, 1 }
  0xa7   :  { %v118_v28 = vadd.f32 %v117_v27, %v116_v25 }
  0xa9   :  { %151 = vpush %v118_v28 }
  0xd6   :  { %s150_s0 = spop %149 }
  0xd7   :  { %v125_v29 = vstv %s150_s0 }
  0xd8   :  { %129 = vst [vmem:[%s192_s2] sm:$0xff] %v125_v29 }
  0xda   :  { %s152_s18 = spop %151 }
  0xdb   :  { %v126_v30 = vstv %s152_s18 }
  0xdc   :  { %130 = vst [vmem:[%s192_s2 + $0x8] sm:$0xff] %v126_v30 }

</bundles_post_ra>
